<compile_context>
chip_gen: v6e
topology: v6e:2x2x1
jax: 0.10.0
libtpu: 0.0.40
codegen_flags: <defaults>
</compile_context>

<pallas_src>
import jax
import jax.numpy as jnp
from jax import lax
from jax.experimental import pallas as pl
from jax.experimental.pallas import tpu as pltpu

K = 9        # kernel_size
PAD = 4      # padding
EPS = 1e-5   # BatchNorm eps


def _make_conv_stats_kernel(L, l_tile, apply_bn_relu):
    """Conv1d (+ optional preceding BN+ReLU) over one (sample-group, L-tile).

    Refs:
      x_hbm : (NBG*GC, PAD+Lp+PAD) f32, HBM (pl.ANY)  margin-padded conv input
      w_ref : (K, GC, GC)          per-tap weights, block-diag within the group
      a_ref : (GC, 1)              BN scale (unused when apply_bn_relu=False)
      c_ref : (GC, 1)              BN shift (unused when apply_bn_relu=False)
      y_ref : (1, GC, l_tile)      raw conv output tile
      st_ref: (1, 1, GC, 2)        per-row [sum, sumsq] over this tile's valid cols
      xb_ref: (GC, l_tile + 2*PAD) VMEM halo'd input tile (scratch)
      sem   : DMA semaphore
    """
    halo_w = l_tile + 2 * PAD

    def kernel(x_hbm, w_ref, a_ref, c_ref, y_ref, st_ref, xb_ref, sem):
        bg = pl.program_id(0)
        lt = pl.program_id(1)
        gc = xb_ref.shape[0]

        # Manual halo DMA: (gc, l_tile + 2*PAD) window, 128-aligned lane start.
        row0 = bg * gc
        if gc % 8 == 0:
            row0 = pl.multiple_of(row0, 8)
        col0 = pl.multiple_of(lt * l_tile, 128)
        cp = pltpu.make_async_copy(
            x_hbm.at[pl.ds(row0, gc), pl.ds(col0, halo_w)], xb_ref, sem)
        cp.start()
        cp.wait()

        xw = xb_ref[...]
        if apply_bn_relu:
            # Buffer column j is padded-array column lt*l_tile + j; the true
            # signal occupies padded columns [PAD, PAD + L).  Zeroing outside
            # reproduces conv2's zero padding (applied AFTER bn1+relu in the
            # reference) and masks the L -> Lp round-up columns.
            pcol = lax.broadcasted_iota(jnp.int32, (1, halo_w), 1) + lt * l_tile
            h = jnp.maximum(xw * a_ref[...] + c_ref[...], 0.0)
            xw = jnp.where((pcol >= PAD) & (pcol < PAD + L), h, 0.0)

        # Shift-and-accumulate conv: K small matmuls over shifted slices of the
        # halo'd tile (no K x im2col temp, no extra VMEM scratch).
        acc = jnp.zeros((gc, l_tile), jnp.float32)
        for k in range(K):
            acc = acc + jnp.dot(w_ref[k], xw[:, k:k + l_tile],
                                preferred_element_type=jnp.float32)

        # Partial BN statistics: reduce over lanes (L) first; the cross-tile /
        # cross-group combine is a handful of scalars done in the wrapper.
        ocol = lax.broadcasted_iota(jnp.int32, (1, l_tile), 1) + lt * l_tile
        ym = acc * (ocol < L).astype(jnp.float32)
        s = jnp.sum(ym, axis=1, keepdims=True)
        ss = jnp.sum(ym * ym, axis=1, keepdims=True)
        st_ref[0, 0, :, :] = jnp.concatenate([s, ss], axis=1)

        y_ref[0, :, :] = acc

    return kernel


def _bn_add_relu_kernel(y_ref, x_ref, a_ref, c_ref, o_ref):
    # out = relu(bn2(y2) + x); pointwise, lane-dense, fully parallel.
    o_ref[0, :, :] = jnp.maximum(
        y_ref[0, :, :] * a_ref[...] + c_ref[...] + x_ref[0, :, :], 0.0
    ).astype(o_ref.dtype)


def basic_block_1d(x_ncl, w1, w2, g1, b1, g2, b2):
    """x_ncl: (N, C, L) float32 (PyTorch NCL). w: (C_out, C_in, K) (PyTorch)."""
    N, C, L = x_ncl.shape
    Cout, Cin, Kw = w1.shape
    assert Cin == C and Cout == C and Kw == K, \
        "downsample=None requires in_channels == out_channels"
    f32 = jnp.float32

    # Sample-group size: block-diagonal weights only WITHIN a group, sized to
    # roughly fill the MXU row height; G must divide N (groups ride the grid).
    G = max(1, min(N, 128 // max(C, 1)))
    while N % G:
        G -= 1
    GC = G * C
    NBG = N // G

    # Lane tile: multiple of 128 (lane-dense stores / MXU columns), <= 512.
    l_tile = min(512, ((L + 127) // 128) * 128)
    n_lt = pl.cdiv(L, l_tile)
    Lp = n_lt * l_tile

    # Activations, lane-dense: rows = (sample-in-group, channel), lanes = L.
    xg = x_ncl.reshape(NBG, GC, L).astype(f32)
    x_lp = jnp.pad(xg, ((0, 0), (0, 0), (0, Lp - L)))                   # (NBG, GC, Lp)
    xp = jnp.pad(x_lp, ((0, 0), (0, 0), (PAD, PAD))).reshape(N * C, Lp + 2 * PAD)

    # Per-tap weights, block-diagonal within one sample group: (K, GC, GC).
    eye_g = jnp.eye(G, dtype=f32)

    def pack_w(w):
        return jnp.stack(
            [jnp.kron(eye_g, w[:, :, k].astype(f32)) for k in range(K)], axis=0)

    w1k, w2k = pack_w(w1), pack_w(w2)

    grid = (NBG, n_lt)
    cparams = pltpu.CompilerParams(
        dimension_semantics=("parallel", "parallel"),
        # Explicit scoped-VMEM budget; leaves headroom under v7x's 64 MiB.
        vmem_limit_bytes=32 * 1024 * 1024)

    any_spec = pl.BlockSpec(memory_space=pl.ANY)
    w_spec = pl.BlockSpec((K, GC, GC), lambda bg, lt: (0, 0, 0))
    row_spec = pl.BlockSpec((GC, 1), lambda bg, lt: (0, 0))
    act_spec = pl.BlockSpec((1, GC, l_tile), lambda bg, lt: (bg, 0, lt))
    st_spec = pl.BlockSpec((1, 1, GC, 2), lambda bg, lt: (bg, lt, 0, 0))
    scratch = [pltpu.VMEM((GC, l_tile + 2 * PAD), f32), pltpu.SemaphoreType.DMA]

    def conv_pass(kernel, src, wk, a_row, c_row):
        return pl.pallas_call(
            kernel,
            grid=grid,
            out_shape=(jax.ShapeDtypeStruct((NBG, GC, Lp), f32),
                       jax.ShapeDtypeStruct((NBG, n_lt, GC, 2), f32)),
            in_specs=[any_spec, w_spec, row_spec, row_spec],
            out_specs=(act_spec, st_spec),
            scratch_shapes=scratch,
            compiler_params=cparams,
        )(src, wk, a_row, c_row)

    def finalize_bn(stats, gamma, beta):
        # stats: (NBG, n_lt, GC, 2) partial [sum, sumsq] per (group-row, tile).
        s = jnp.sum(stats[..., 0], axis=(0, 1)).reshape(G, C).sum(axis=0)
        ss = jnp.sum(stats[..., 1], axis=(0, 1)).reshape(G, C).sum(axis=0)
        cnt = jnp.float32(N * L)
        mean = s / cnt
        var = ss / cnt - mean * mean           # biased (training-mode) variance
        a = gamma.astype(f32) * lax.rsqrt(var + EPS)
        c = beta.astype(f32) - mean * a
        return jnp.tile(a, G).reshape(GC, 1), jnp.tile(c, G).reshape(GC, 1)

    ones_r = jnp.ones((GC, 1), f32)
    zeros_r = jnp.zeros((GC, 1), f32)

    # ---- pass 1: conv1 + bn1 partial stats ----
    y1, st1 = conv_pass(_make_conv_stats_kernel(L, l_tile, apply_bn_relu=False),
                        xp, w1k, ones_r, zeros_r)
    a1, c1 = finalize_bn(st1, g1, b1)

    # ---- pass 2: bn1 + relu + conv2 + bn2 partial stats ----
    # TODO(synk): write the PAD margins from inside pass 1 (or alias buffers)
    # instead of this wrapper-side jnp.pad of y1; the margin values themselves
    # are masked in-kernel, only the allocation width matters.
    y1p = jnp.pad(y1, ((0, 0), (0, 0), (PAD, PAD))).reshape(N * C, Lp + 2 * PAD)
    y2, st2 = conv_pass(_make_conv_stats_kernel(L, l_tile, apply_bn_relu=True),
                        y1p, w2k, a1, c1)
    a2, c2 = finalize_bn(st2, g2, b2)

    # ---- pass 3: bn2 + identity skip + relu ----
    out = pl.pallas_call(
        _bn_add_relu_kernel,
        grid=grid,
        out_shape=jax.ShapeDtypeStruct((NBG, GC, Lp), x_ncl.dtype),
        in_specs=[act_spec, act_spec, row_spec, row_spec],
        out_specs=act_spec,
        compiler_params=cparams,
    )(y2, x_lp, a2, c2)

    return out[:, :, :L].reshape(N, C, L)


def reference(x, w1, w2, g1, b1, g2, b2):
    """Pure-JAX reference of the PyTorch forward (NCL layout)."""
    def conv(v, w):
        return lax.conv_general_dilated(
            v, w, window_strides=(1,), padding=[(PAD, PAD)],
            dimension_numbers=("NCH", "OIH", "NCH"),
            precision=lax.Precision.HIGHEST)

    def bn(y, g, b):
        mean = y.mean(axis=(0, 2), keepdims=True)
        var = ((y - mean) ** 2).mean(axis=(0, 2), keepdims=True)
        return (y - mean) * lax.rsqrt(var + EPS) * g[None, :, None] + b[None, :, None]

    out = jnp.maximum(bn(conv(x, w1), g1, b1), 0.0)
    out = bn(conv(out, w2), g2, b2) + x
    return jnp.maximum(out, 0.0)


if __name__ == "__main__":
    N, C, L = 2, 4, 16   # batch=2, channels=4 (in == out), length=16
    key = jax.random.PRNGKey(0)
    kx, kw1, kw2, kg1, kb1, kg2, kb2 = jax.random.split(key, 7)

    x = jax.random.normal(kx, (N, C, L), jnp.float32)
    scale = 1.0 / jnp.sqrt(jnp.float32(C * K))
    w1 = jax.random.normal(kw1, (C, C, K), jnp.float32) * scale
    w2 = jax.random.normal(kw2, (C, C, K), jnp.float32) * scale
    g1 = 1.0 + 0.1 * jax.random.normal(kg1, (C,), jnp.float32)
    b1 = 0.1 * jax.random.normal(kb1, (C,), jnp.float32)
    g2 = 1.0 + 0.1 * jax.random.normal(kg2, (C,), jnp.float32)
    b2 = 0.1 * jax.random.normal(kb2, (C,), jnp.float32)

    out = jax.block_until_ready(basic_block_1d(x, w1, w2, g1, b1, g2, b2))
    ref = reference(x, w1, w2, g1, b1, g2, b2)

    assert out.shape == (N, C, L)
    err = float(jnp.max(jnp.abs(out - ref)))
    assert err < 1e-3, f"mismatch vs reference: max abs err {err}"

    print("KERNEL_OK")
</pallas_src>

<mosaic_0001>
module attributes {stable_mosaic.version = 11 : i64} {
  func.func @kernel(%arg0: i32, %arg1: i32, %arg2: memref<8x136xf32, #tpu.memory_space<any>>, %arg3: memref<9x8x8xf32, #tpu.memory_space<vmem>>, %arg4: memref<8x1xf32, #tpu.memory_space<vmem>>, %arg5: memref<8x1xf32, #tpu.memory_space<vmem>>, %arg6: memref<1x8x128xf32, #tpu.memory_space<vmem>>, %arg7: memref<1x1x8x2xf32, #tpu.memory_space<vmem>>, %arg8: memref<8x136xf32, #tpu.memory_space<vmem>>, %arg9: memref<!tpu.dma_semaphore, #tpu.memory_space<semaphore_mem>>) attributes {dimension_semantics = [#tpu.dimension_semantics<parallel>, #tpu.dimension_semantics<parallel>], iteration_bounds = array<i64: 1, 1>, scalar_prefetch = 0 : i64, scratch_operands = 2 : i64, tpu.core_type = #tpu.core_type<tc>, window_params = [{}, {pipeline_mode = #tpu.pipeline_mode<synchronous>, transform_indices = @transform_1, window_bounds = array<i64: 9, 8, 8>}, {pipeline_mode = #tpu.pipeline_mode<synchronous>, transform_indices = @transform_2, window_bounds = array<i64: 8, 1>}, {pipeline_mode = #tpu.pipeline_mode<synchronous>, transform_indices = @transform_3, window_bounds = array<i64: 8, 1>}, {transform_indices = @transform_4, window_bounds = array<i64: 1, 8, 128>}, {transform_indices = @transform_5, window_bounds = array<i64: 1, 1, 8, 2>}]} {
    %c8_i32 = arith.constant 8 : i32
    %0 = arith.muli %arg0, %c8_i32 : i32
    %1 = tpu.assume_multiple %0, 8 : i32
    %c128_i32 = arith.constant 128 : i32
    %2 = arith.muli %arg1, %c128_i32 : i32
    %3 = tpu.assume_multiple %2, 128 : i32
    %4 = tpu.memref_slice %arg2[%1, %3] : memref<8x136xf32, #tpu.memory_space<any>> -> memref<8x136xf32, #tpu.memory_space<any>>
    tpu.enqueue_dma source(%4 : memref<8x136xf32, #tpu.memory_space<any>>) target(%arg8 : memref<8x136xf32, #tpu.memory_space<vmem>>) target_semaphore(%arg9 : memref<!tpu.dma_semaphore, #tpu.memory_space<semaphore_mem>>)
    %5 = tpu.memref_slice %arg2[%1, %3] : memref<8x136xf32, #tpu.memory_space<any>> -> memref<8x136xf32, #tpu.memory_space<any>>
    tpu.wait_dma2 semaphore(%arg9 : memref<!tpu.dma_semaphore, #tpu.memory_space<semaphore_mem>>) src(%5 : memref<8x136xf32, #tpu.memory_space<any>>) dst(%arg8 : memref<8x136xf32, #tpu.memory_space<vmem>>)
    %c0 = arith.constant 0 : index
    %c0_0 = arith.constant 0 : index
    %6 = vector.load %arg8[%c0, %c0_0] : memref<8x136xf32, #tpu.memory_space<vmem>>, vector<8x136xf32>
    %cst = arith.constant 0.000000e+00 : f32
    %7 = vector.broadcast %cst : f32 to vector<8x128xf32>
    %c0_1 = arith.constant 0 : index
    %c0_2 = arith.constant 0 : index
    %c0_3 = arith.constant 0 : index
    %8 = vector.load %arg3[%c0_1, %c0_2, %c0_3] : memref<9x8x8xf32, #tpu.memory_space<vmem>>, vector<1x8x8xf32>
    %9 = vector.shape_cast %8 : vector<1x8x8xf32> to vector<8x8xf32>
    %10 = vector.extract_strided_slice %6 {offsets = [0, 0], sizes = [8, 128], strides = [1, 1]} : vector<8x136xf32> to vector<8x128xf32>
    %cst_4 = arith.constant dense<0.000000e+00> : vector<8x128xf32>
    %11 = tpu.matmul %9, %10, %cst_4 {dimension_numbers = #tpu.dot_dimension_numbers<[1], [0], [0], [1], [0, 0, 1, 1], [], []>} : vector<8x8xf32>, vector<8x128xf32>, vector<8x128xf32> -> vector<8x128xf32>
    %12 = arith.addf %7, %11 : vector<8x128xf32>
    %c1 = arith.constant 1 : index
    %c0_5 = arith.constant 0 : index
    %c0_6 = arith.constant 0 : index
    %13 = vector.load %arg3[%c1, %c0_5, %c0_6] : memref<9x8x8xf32, #tpu.memory_space<vmem>>, vector<1x8x8xf32>
    %14 = vector.shape_cast %13 : vector<1x8x8xf32> to vector<8x8xf32>
    %15 = vector.extract_strided_slice %6 {offsets = [0, 1], sizes = [8, 128], strides = [1, 1]} : vector<8x136xf32> to vector<8x128xf32>
    %cst_7 = arith.constant dense<0.000000e+00> : vector<8x128xf32>
    %16 = tpu.matmul %14, %15, %cst_7 {dimension_numbers = #tpu.dot_dimension_numbers<[1], [0], [0], [1], [0, 0, 1, 1], [], []>} : vector<8x8xf32>, vector<8x128xf32>, vector<8x128xf32> -> vector<8x128xf32>
    %17 = arith.addf %12, %16 : vector<8x128xf32>
    %c2 = arith.constant 2 : index
    %c0_8 = arith.constant 0 : index
    %c0_9 = arith.constant 0 : index
    %18 = vector.load %arg3[%c2, %c0_8, %c0_9] : memref<9x8x8xf32, #tpu.memory_space<vmem>>, vector<1x8x8xf32>
    %19 = vector.shape_cast %18 : vector<1x8x8xf32> to vector<8x8xf32>
    %20 = vector.extract_strided_slice %6 {offsets = [0, 2], sizes = [8, 128], strides = [1, 1]} : vector<8x136xf32> to vector<8x128xf32>
    %cst_10 = arith.constant dense<0.000000e+00> : vector<8x128xf32>
    %21 = tpu.matmul %19, %20, %cst_10 {dimension_numbers = #tpu.dot_dimension_numbers<[1], [0], [0], [1], [0, 0, 1, 1], [], []>} : vector<8x8xf32>, vector<8x128xf32>, vector<8x128xf32> -> vector<8x128xf32>
    %22 = arith.addf %17, %21 : vector<8x128xf32>
    %c3 = arith.constant 3 : index
    %c0_11 = arith.constant 0 : index
    %c0_12 = arith.constant 0 : index
    %23 = vector.load %arg3[%c3, %c0_11, %c0_12] : memref<9x8x8xf32, #tpu.memory_space<vmem>>, vector<1x8x8xf32>
    %24 = vector.shape_cast %23 : vector<1x8x8xf32> to vector<8x8xf32>
    %25 = vector.extract_strided_slice %6 {offsets = [0, 3], sizes = [8, 128], strides = [1, 1]} : vector<8x136xf32> to vector<8x128xf32>
    %cst_13 = arith.constant dense<0.000000e+00> : vector<8x128xf32>
    %26 = tpu.matmul %24, %25, %cst_13 {dimension_numbers = #tpu.dot_dimension_numbers<[1], [0], [0], [1], [0, 0, 1, 1], [], []>} : vector<8x8xf32>, vector<8x128xf32>, vector<8x128xf32> -> vector<8x128xf32>
    %27 = arith.addf %22, %26 : vector<8x128xf32>
    %c4 = arith.constant 4 : index
    %c0_14 = arith.constant 0 : index
    %c0_15 = arith.constant 0 : index
    %28 = vector.load %arg3[%c4, %c0_14, %c0_15] : memref<9x8x8xf32, #tpu.memory_space<vmem>>, vector<1x8x8xf32>
    %29 = vector.shape_cast %28 : vector<1x8x8xf32> to vector<8x8xf32>
    %30 = vector.extract_strided_slice %6 {offsets = [0, 4], sizes = [8, 128], strides = [1, 1]} : vector<8x136xf32> to vector<8x128xf32>
    %cst_16 = arith.constant dense<0.000000e+00> : vector<8x128xf32>
    %31 = tpu.matmul %29, %30, %cst_16 {dimension_numbers = #tpu.dot_dimension_numbers<[1], [0], [0], [1], [0, 0, 1, 1], [], []>} : vector<8x8xf32>, vector<8x128xf32>, vector<8x128xf32> -> vector<8x128xf32>
    %32 = arith.addf %27, %31 : vector<8x128xf32>
    %c5 = arith.constant 5 : index
    %c0_17 = arith.constant 0 : index
    %c0_18 = arith.constant 0 : index
    %33 = vector.load %arg3[%c5, %c0_17, %c0_18] : memref<9x8x8xf32, #tpu.memory_space<vmem>>, vector<1x8x8xf32>
    %34 = vector.shape_cast %33 : vector<1x8x8xf32> to vector<8x8xf32>
    %35 = vector.extract_strided_slice %6 {offsets = [0, 5], sizes = [8, 128], strides = [1, 1]} : vector<8x136xf32> to vector<8x128xf32>
    %cst_19 = arith.constant dense<0.000000e+00> : vector<8x128xf32>
    %36 = tpu.matmul %34, %35, %cst_19 {dimension_numbers = #tpu.dot_dimension_numbers<[1], [0], [0], [1], [0, 0, 1, 1], [], []>} : vector<8x8xf32>, vector<8x128xf32>, vector<8x128xf32> -> vector<8x128xf32>
    %37 = arith.addf %32, %36 : vector<8x128xf32>
    %c6 = arith.constant 6 : index
    %c0_20 = arith.constant 0 : index
    %c0_21 = arith.constant 0 : index
    %38 = vector.load %arg3[%c6, %c0_20, %c0_21] : memref<9x8x8xf32, #tpu.memory_space<vmem>>, vector<1x8x8xf32>
    %39 = vector.shape_cast %38 : vector<1x8x8xf32> to vector<8x8xf32>
    %40 = vector.extract_strided_slice %6 {offsets = [0, 6], sizes = [8, 128], strides = [1, 1]} : vector<8x136xf32> to vector<8x128xf32>
    %cst_22 = arith.constant dense<0.000000e+00> : vector<8x128xf32>
    %41 = tpu.matmul %39, %40, %cst_22 {dimension_numbers = #tpu.dot_dimension_numbers<[1], [0], [0], [1], [0, 0, 1, 1], [], []>} : vector<8x8xf32>, vector<8x128xf32>, vector<8x128xf32> -> vector<8x128xf32>
    %42 = arith.addf %37, %41 : vector<8x128xf32>
    %c7 = arith.constant 7 : index
    %c0_23 = arith.constant 0 : index
    %c0_24 = arith.constant 0 : index
    %43 = vector.load %arg3[%c7, %c0_23, %c0_24] : memref<9x8x8xf32, #tpu.memory_space<vmem>>, vector<1x8x8xf32>
    %44 = vector.shape_cast %43 : vector<1x8x8xf32> to vector<8x8xf32>
    %45 = vector.extract_strided_slice %6 {offsets = [0, 7], sizes = [8, 128], strides = [1, 1]} : vector<8x136xf32> to vector<8x128xf32>
    %cst_25 = arith.constant dense<0.000000e+00> : vector<8x128xf32>
    %46 = tpu.matmul %44, %45, %cst_25 {dimension_numbers = #tpu.dot_dimension_numbers<[1], [0], [0], [1], [0, 0, 1, 1], [], []>} : vector<8x8xf32>, vector<8x128xf32>, vector<8x128xf32> -> vector<8x128xf32>
    %47 = arith.addf %42, %46 : vector<8x128xf32>
    %c8 = arith.constant 8 : index
    %c0_26 = arith.constant 0 : index
    %c0_27 = arith.constant 0 : index
    %48 = vector.load %arg3[%c8, %c0_26, %c0_27] : memref<9x8x8xf32, #tpu.memory_space<vmem>>, vector<1x8x8xf32>
    %49 = vector.shape_cast %48 : vector<1x8x8xf32> to vector<8x8xf32>
    %50 = vector.extract_strided_slice %6 {offsets = [0, 8], sizes = [8, 128], strides = [1, 1]} : vector<8x136xf32> to vector<8x128xf32>
    %cst_28 = arith.constant dense<0.000000e+00> : vector<8x128xf32>
    %51 = tpu.matmul %49, %50, %cst_28 {dimension_numbers = #tpu.dot_dimension_numbers<[1], [0], [0], [1], [0, 0, 1, 1], [], []>} : vector<8x8xf32>, vector<8x128xf32>, vector<8x128xf32> -> vector<8x128xf32>
    %52 = arith.addf %47, %51 : vector<8x128xf32>
    %53 = tpu.iota {dimensions = array<i32: 1>} : vector<1x128xi32>
    %c128_i32_29 = arith.constant 128 : i32
    %54 = arith.muli %arg1, %c128_i32_29 : i32
    %55 = vector.broadcast %54 : i32 to vector<1x128xi32>
    %56 = arith.addi %53, %55 : vector<1x128xi32>
    %c16_i32 = arith.constant 16 : i32
    %57 = vector.broadcast %c16_i32 : i32 to vector<1x128xi32>
    %58 = arith.cmpi slt, %56, %57 : vector<1x128xi32>
    %59 = arith.extui %58 : vector<1x128xi1> to vector<1x128xi32>
    %60 = arith.sitofp %59 : vector<1x128xi32> to vector<1x128xf32>
    %61 = vector.broadcast %60 : vector<1x128xf32> to vector<8x128xf32>
    %62 = arith.mulf %52, %61 : vector<8x128xf32>
    %cst_30 = arith.constant dense<0.000000e+00> : vector<8xf32>
    %63 = vector.multi_reduction <add>, %62, %cst_30 [1] : vector<8x128xf32> to vector<8xf32>
    %64 = vector.shape_cast %63 : vector<8xf32> to vector<8x1xf32>
    %65 = arith.mulf %62, %62 : vector<8x128xf32>
    %cst_31 = arith.constant dense<0.000000e+00> : vector<8xf32>
    %66 = vector.multi_reduction <add>, %65, %cst_31 [1] : vector<8x128xf32> to vector<8xf32>
    %67 = vector.shape_cast %66 : vector<8xf32> to vector<8x1xf32>
    %68 = tpu.concatenate %64, %67 in 1 : vector<8x1xf32>, vector<8x1xf32> -> vector<8x2xf32>
    %c0_32 = arith.constant 0 : index
    %c0_33 = arith.constant 0 : index
    %c0_34 = arith.constant 0 : index
    %c0_35 = arith.constant 0 : index
    %69 = vector.load %arg7[%c0_32, %c0_33, %c0_34, %c0_35] : memref<1x1x8x2xf32, #tpu.memory_space<vmem>>, vector<1x1x8x2xf32>
    %70 = vector.shape_cast %69 : vector<1x1x8x2xf32> to vector<8x2xf32>
    %71 = vector.shape_cast %68 : vector<8x2xf32> to vector<1x1x8x2xf32>
    tpu.vector_store %arg7[%c0_32, %c0_33, %c0_34, %c0_35], %71 {strides = array<i32>} : memref<1x1x8x2xf32, #tpu.memory_space<vmem>>, vector<1x1x8x2xf32>,
    %c0_36 = arith.constant 0 : index
    %c0_37 = arith.constant 0 : index
    %c0_38 = arith.constant 0 : index
    %72 = vector.load %arg6[%c0_36, %c0_37, %c0_38] : memref<1x8x128xf32, #tpu.memory_space<vmem>>, vector<1x8x128xf32>
    %73 = vector.shape_cast %72 : vector<1x8x128xf32> to vector<8x128xf32>
    %74 = vector.shape_cast %52 : vector<8x128xf32> to vector<1x8x128xf32>
    tpu.vector_store %arg6[%c0_36, %c0_37, %c0_38], %74 {strides = array<i32>} : memref<1x8x128xf32, #tpu.memory_space<vmem>>, vector<1x8x128xf32>,
    return
  }
  func.func @transform_1(%arg0: i32, %arg1: i32) -> (i32, i32, i32) {
    %c0_i32 = arith.constant 0 : i32
    %c0_i32_0 = arith.constant 0 : i32
    %c0_i32_1 = arith.constant 0 : i32
    %c0_i32_2 = arith.constant 0 : i32
    return %c0_i32, %c0_i32_0, %c0_i32_1 : i32, i32, i32
  }
  func.func @transform_2(%arg0: i32, %arg1: i32) -> (i32, i32) {
    %c0_i32 = arith.constant 0 : i32
    %c0_i32_0 = arith.constant 0 : i32
    %c0_i32_1 = arith.constant 0 : i32
    return %c0_i32, %c0_i32_0 : i32, i32
  }
  func.func @transform_3(%arg0: i32, %arg1: i32) -> (i32, i32) {
    %c0_i32 = arith.constant 0 : i32
    %c0_i32_0 = arith.constant 0 : i32
    %c0_i32_1 = arith.constant 0 : i32
    return %c0_i32, %c0_i32_0 : i32, i32
  }
  func.func @transform_4(%arg0: i32, %arg1: i32) -> (i32, i32, i32) {
    %c0_i32 = arith.constant 0 : i32
    %c0_i32_0 = arith.constant 0 : i32
    return %arg0, %c0_i32, %arg1 : i32, i32, i32
  }
  func.func @transform_5(%arg0: i32, %arg1: i32) -> (i32, i32, i32, i32) {
    %c0_i32 = arith.constant 0 : i32
    %c0_i32_0 = arith.constant 0 : i32
    %c0_i32_1 = arith.constant 0 : i32
    return %arg0, %arg1, %c0_i32, %c0_i32_0 : i32, i32, i32, i32
  }
}

</mosaic_0001>

<bundles_post_ra>
// kernel: tpu_custom_call.1
= control target key start
LH: loop header
LB: loop body
LE: loop exit
PB: predicated region body
PF: predicated region fallthrough
CT: control target
= control target key end

     0   :  { %11 = vsyncpa [#allocation5], 0  ;;  %s1107_s0 = inlined_call_operand.vmem [shape: f32[8,136], index: 0, kind: input, shape index: {}]   ;;  %s1108_s1 = inlined_call_operand.vmem [shape: f32[9,8,8], index: 1, kind: input, shape index: {}]   ;;  %s1109_s2 = inlined_call_operand.vmem [shape: f32[8,1], index: 2, kind: input, shape index: {}]   ;;  %s1110_s3 = inlined_call_operand.vmem [shape: f32[8,1], index: 3, kind: input, shape index: {}]   ;;  %s1111_s4 = inlined_call_operand.hbm [shape: f32[1,8,128], index: 4, kind: output, shape index: {0}]   ;;  %s1112_s5 = inlined_call_operand.vmem [shape: f32[1,1,8,2], index: 5, kind: output, shape index: {1}]  }
   0x1   :  { %v61_v0 = vld [vmem:[%s1107_s0] sm:$0xff]  ;;  %v63_v1 = vld [vmem:[%s1107_s0 + $0x8] sm:$0xff] }
   0x2   :  { %72 = vsyncadd [#allocation3], 256 }
   0x3   :  { %986 = dma.done.wait [#allocation3], 256 }
   0x4   :  { %987 = vsyncadd [#allocation3], 4294967040  ;;  %s990_s2 = smov 126   ;;  %s991_s3 = smov 127   ;;  %v992_v2 = vmov 0.0   ;;  %vm993_vm0 = vmmov 0   ;;  %v819_v51 = vlaneseq }
   0x5   :  { %240 = vrot.lane.b32.xlu1 %v61_v0, %s990_s2  ;;  %84 = vrot.lane.b32.xlu0 %v61_v0, %s991_s3  ;;  %vm91_vm1 = vcmask 64512   ;;  %v79_v3 = vld [vmem:[%s1108_s1] sm:$0xff]  ;;  %s994_s23 = smov 125   ;;  %s995_s24 = smov 124   ;;  %vm88_vm2 = vcmask 1039360   ;;  %vm244_vm3 = vcmask 1031168  }
   0x6   :  { %910 = vmatprep.subr.mxu0 %v992_v2  ;;  %912 = vmatprep.mubr.msk.f32.mxu0 %vm993_vm0, %v992_v2  ;;  %s996_s25 = smov 123   ;;  %s997_s26 = smov 122   ;;  %v873_v8 = vld [vmem:[%s1108_s1 + $0x8] sm:$0xff]  ;;  %vm327_vm4 = vcmask 1022976   ;;  %v876_v13 = vld [vmem:[%s1108_s1 + $0x10] sm:$0xff]  ;;  %v878_v15 = vld [vmem:[%s1108_s1 + $0x18] sm:$0xff] }
   0x7   :  { %915 = vmatprep.subr.mxu1 %v992_v2  ;;  %917 = vmatprep.mubr.msk.f32.mxu1 %vm993_vm0, %v992_v2  ;;  %s998_s27 = smov 121   ;;  %s999_s28 = smov 120   ;;  %vm410_vm5 = vcmask 1014784   ;;  %v880_v18 = vld [vmem:[%s1108_s1 + $0x20] sm:$0xff]  ;;  %vm493_vm6 = vcmask 1006592   ;;  %v882_v22 = vld [vmem:[%s1108_s1 + $0x28] sm:$0xff] }
   0x8   :  { %916 = vmatpush3.msra.mxu1 %v61_v0  ;;  %vm576_vm7 = vcmask 998400   ;;  %v884_v26 = vld [vmem:[%s1108_s1 + $0x30] sm:$0xff]  ;;  %vm659_vm8 = vcmask 990208   ;;  %v886_v30 = vld [vmem:[%s1108_s1 + $0x38] sm:$0xff]  ;;  %vm742_vm9 = vcmask 982016   ;;  %v888_v34 = vld [vmem:[%s1108_s1 + $0x40] sm:$0xff] }
   0x9   :  { %242 = vrot.lane.b32.xlu1 %v63_v1, %s990_s2  ;;  %86 = vrot.lane.b32.xlu0 %v63_v1, %s991_s3  ;;  %v820_v55 = vand.u32 127, %v819_v51  ;;  %s1000_s1 = smov [#allocation4]  }
   0xa   :  { %925 = vmatprep.subr.mxu1 %v992_v2  ;;  %918 = vmatmul.mubr.msk.f32.vlgmr.msra.gmra.mxu1 %vm91_vm1, %v79_v3  ;;  %s843_s20 = sshll.u32 %s1000_s1, 4  ;;  %s844_s20 = int_to_ptr.vmem [resolvable:$true] %s843_s20 }
   0xb   :  { %927 = vmatprep.mubr.msk.f32.mxu1 %vm993_vm0, %v992_v2  ;;  %vm823_vm10 = vcmp.lt.s32.totalorder %v820_v55, 16  ;;  %s966_s21 = scalar_lea.vmem %s844_s20, 128  ;;  %p971_p1 = scmp.lt.s32.totalorder %s844_s20, %s844_s20 }
   0xc   :  { %v890_v62 = vsel %vm823_vm10, 1.0, %v992_v2  ;;  %p967_p0 = scmp.ne.s32.totalorder %s844_s20, %s966_s21  ;;  %p972_p2 = scmp.lt.s32.totalorder %s966_s21, %s966_s21 }
   0xd   :  { %325 = vrot.lane.b32.xlu1 %v63_v1, %s994_s23  ;;  %323 = vrot.lane.b32.xlu0 %v61_v0, %s994_s23 }
   0xe   :  { %p973_p3 = por %p972_p2, %p971_p1 }
  0x10   :  { %p974_p4 = pnand %p973_p3, %p967_p0 }
  0x11   :  { %408 = vrot.lane.b32.xlu1 %v63_v1, %s995_s24  ;;  %406 = vrot.lane.b32.xlu0 %v61_v0, %s995_s24 }
  0x15   :  { %491 = vrot.lane.b32.xlu1 %v63_v1, %s996_s25  ;;  %489 = vrot.lane.b32.xlu0 %v61_v0, %s996_s25 }
  0x19   :  { %574 = vrot.lane.b32.xlu1 %v63_v1, %s997_s26  ;;  %572 = vrot.lane.b32.xlu0 %v61_v0, %s997_s26 }
  0x1d   :  { %657 = vrot.lane.b32.xlu1 %v63_v1, %s998_s27  ;;  %655 = vrot.lane.b32.xlu0 %v61_v0, %s998_s27 }
  0x21   :  { %740 = vrot.lane.b32.xlu1 %v63_v1, %s999_s28  ;;  %738 = vrot.lane.b32.xlu0 %v61_v0, %s999_s28 }
  0x77   :  { %v241_v4 = vpop.permute.xlu1 %240  ;;  %v85_v5 = vpop.permute.xlu0 %84 }
  0x7b   :  { %v243_v6 = vpop.permute.xlu1 %242  ;;  %v87_v7 = vpop.permute.xlu0 %86 }
  0x7c   :  { %v89_v9 = vsel %vm88_vm2, %v85_v5, %v87_v7  ;;  %v245_v10 = vsel %vm244_vm3, %v241_v4, %v243_v6 }
  0x7d   :  { %911 = vmatpush3.msra.mxu0 %v89_v9 }
  0x7e   :  { %920 = vmatprep.subr.mxu0 %v992_v2  ;;  %913 = vmatmul.mubr.msk.f32.vlgmr.msra.gmra.mxu0 %vm91_vm1, %v873_v8 }
  0x7f   :  { %v326_v11 = vpop.permute.xlu1 %325  ;;  %v324_v12 = vpop.permute.xlu0 %323  ;;  %921 = vmatpush3.msra.mxu0 %v245_v10  ;;  %922 = vmatprep.mubr.msk.f32.mxu0 %vm993_vm0, %v992_v2 }
  0x80   :  { %v328_v14 = vsel %vm327_vm4, %v324_v12, %v326_v11  ;;  %930 = vmatprep.subr.mxu0 %v992_v2 }
  0x81   :  { %926 = vmatpush3.msra.mxu1 %v328_v14 }
  0x82   :  { %923 = vmatmul.mubr.msk.f32.vlgmr.msra.gmra.mxu0 %vm91_vm1, %v876_v13  ;;  %935 = vmatprep.subr.mxu1 %v992_v2 }
  0x83   :  { %v409_v16 = vpop.permute.xlu1 %408  ;;  %v407_v17 = vpop.permute.xlu0 %406  ;;  %928 = vmatmul.mubr.msk.f32.vlgmr.msra.gmra.mxu1 %vm91_vm1, %v878_v15  ;;  %932 = vmatprep.mubr.msk.f32.mxu0 %vm993_vm0, %v992_v2 }
  0x84   :  { %v411_v19 = vsel %vm410_vm5, %v407_v17, %v409_v16  ;;  %937 = vmatprep.mubr.msk.f32.mxu1 %vm993_vm0, %v992_v2 }
  0x85   :  { %931 = vmatpush3.msra.mxu0 %v411_v19 }
  0x86   :  { %940 = vmatprep.subr.mxu0 %v992_v2  ;;  %933 = vmatmul.mubr.msk.f32.vlgmr.msra.gmra.mxu0 %vm91_vm1, %v880_v18 }
  0x87   :  { %v492_v20 = vpop.permute.xlu1 %491  ;;  %v490_v21 = vpop.permute.xlu0 %489  ;;  %942 = vmatprep.mubr.msk.f32.mxu0 %vm993_vm0, %v992_v2 }
  0x88   :  { %v494_v23 = vsel %vm493_vm6, %v490_v21, %v492_v20 }
  0x89   :  { %936 = vmatpush3.msra.mxu1 %v494_v23 }
  0x8a   :  { %938 = vmatmul.mubr.msk.f32.vlgmr.msra.gmra.mxu1 %vm91_vm1, %v882_v22  ;;  %945 = vmatprep.subr.mxu1 %v992_v2 }
  0x8b   :  { %v575_v24 = vpop.permute.xlu1 %574  ;;  %v573_v25 = vpop.permute.xlu0 %572  ;;  %947 = vmatprep.mubr.msk.f32.mxu1 %vm993_vm0, %v992_v2 }
  0x8c   :  { %v577_v27 = vsel %vm576_vm7, %v573_v25, %v575_v24 }
  0x8d   :  { %941 = vmatpush3.msra.mxu0 %v577_v27 }
  0x8e   :  { %943 = vmatmul.mubr.msk.f32.vlgmr.msra.gmra.mxu0 %vm91_vm1, %v884_v26  ;;  %950 = vmatprep.subr.mxu0 %v992_v2 }
  0x8f   :  { %v658_v28 = vpop.permute.xlu1 %657  ;;  %v656_v29 = vpop.permute.xlu0 %655  ;;  %952 = vmatprep.mubr.msk.f32.mxu0 %vm993_vm0, %v992_v2 }
  0x90   :  { %v660_v31 = vsel %vm659_vm8, %v656_v29, %v658_v28 }
  0x91   :  { %946 = vmatpush3.msra.mxu1 %v660_v31 }
  0x92   :  { %948 = vmatmul.mubr.msk.f32.vlgmr.msra.gmra.mxu1 %vm91_vm1, %v886_v30 }
  0x93   :  { %v741_v32 = vpop.permute.xlu1 %740  ;;  %v739_v33 = vpop.permute.xlu0 %738 }
  0x94   :  { %v743_v35 = vsel %vm742_vm9, %v739_v33, %v741_v32 }
  0x95   :  { %951 = vmatpush3.msra.mxu0 %v743_v35 }
  0x96   :  { %953 = vmatmul.mubr.msk.f32.vlgmr.msra.gmra.mxu0 %vm91_vm1, %v888_v34 }
  0xca   :  { %v234_v36 = vpop.f32.mrf.mxu1 }
  0xcc   :  { %v919_v37 = vpop.f32.mrf.mxu1 }
 0x13e   :  { %v161_v38 = vpop.f32.mrf.mxu0 }
 0x13f   :  { %v235_v39 = vadd.f32 %v234_v36, %v161_v38 }
 0x140   :  { %v914_v40 = vpop.f32.mrf.mxu0 }
 0x142   :  { %v316_v41 = vpop.f32.mrf.mxu0 }
 0x143   :  { %v320_v42 = vadd.f32 %v316_v41, %v235_v39  ;;  %v399_v43 = vpop.f32.mrf.mxu1 }
 0x144   :  { %v924_v44 = vpop.f32.mrf.mxu0 }
 0x145   :  { %v403_v45 = vadd.f32 %v399_v43, %v320_v42  ;;  %v929_v46 = vpop.f32.mrf.mxu1 }
 0x146   :  { %v482_v47 = vpop.f32.mrf.mxu0 }
 0x147   :  { %v486_v49 = vadd.f32 %v482_v47, %v403_v45 }
 0x148   :  { %v934_v48 = vpop.f32.mrf.mxu0 }
 0x14a   :  { %v565_v50 = vpop.f32.mrf.mxu1 }
 0x14b   :  { %v569_v53 = vadd.f32 %v565_v50, %v486_v49 }
 0x14c   :  { %v939_v52 = vpop.f32.mrf.mxu1 }
 0x14e   :  { %v648_v54 = vpop.f32.mrf.mxu0 }
 0x14f   :  { %v652_v57 = vadd.f32 %v648_v54, %v569_v53 }
 0x150   :  { %v944_v56 = vpop.f32.mrf.mxu0 }
 0x152   :  { %v731_v58 = vpop.f32.mrf.mxu1 }
 0x153   :  { %v735_v60 = vadd.f32 %v731_v58, %v652_v57 }
 0x154   :  { %v949_v59 = vpop.f32.mrf.mxu1 }
 0x156   :  { %v814_v61 = vpop.f32.mrf.mxu0 }
 0x157   :  { %v818_v63 = vadd.f32 %v814_v61, %v735_v60 }
 0x158   :  { %v954_v0 = vpop.f32.mrf.mxu0 }
 0x159   :  { %836 = vst [vmem:[#allocation4] sm:$0xff] %v818_v63  ;;  %v826_v1 = vmul.f32 %v890_v62, %v818_v63 }
 0x15b   :  { %827 = vadd.xlane.f32.xlu0 %v826_v1  ;;  %v829_v3 = vmul.f32 %v826_v1, %v826_v1 }
 0x15d   :  { %830 = vadd.xlane.f32.xlu1 %v829_v3 }
 0x15e   :  { %977 = shalt.err (!%p974_p4)
}
 0x15f   :  { %846 = dma.vmem_to_hbm [thread:$0]  %s844_s20, 128, %s1111_s4, [#allocation5]   ;;  %vm832_vm11 = vcmask 7168   ;;  %vm834_vm12 = vcmask 15360  }
 0x1e4   :  { %v828_v2 = vpop.xlane.xlu0 %827 }
 0x1e6   :  { %v831_v4 = vpop.xlane.xlu1 %830 }
 0x1e7   :  { %v833_v5 = vsel %vm832_vm11, %v828_v2, %v831_v4 }
 0x1e8   :  { %835 = vst.msk [vmem:[%s1112_s5] sm:$0xff] %vm834_vm12, %v833_v5 }
 0x1e9   :  { %988 = dma.done.wait [#allocation5], 128  }
 0x1ea   :  { %989 = vsyncadd [#allocation5], 4294967168 }
 0x1eb   :  { %854 = vsyncpa [#allocation5], 1 }
 0x1ec   :  { %855 = vsyncmov [#allocation3] }
 0x1ef   :  { %s856_s23 = vpop.sfrf %855 }
 0x1f0   :  { %p891_p5 = scmp.ne.s32.totalorder %s856_s23, 0 }
 0x1f2   :  { %860 = shalt.err (%p891_p5)  }

</bundles_post_ra>
